<compile_context>
chip_gen: v7x
topology: tpu7x:2x2x1
jax: 0.10.0
libtpu: 0.0.40
codegen_flags: <defaults>
</compile_context>

<pallas_src>
import functools

import jax
import jax.numpy as jnp
from jax.experimental import pallas as pl
from jax.experimental.pallas import tpu as pltpu

LANES = 128
TARGET_TILE_BYTES = 1 << 20  # ~1 MiB per input tile (per pipeline buffer)


def _recall_kernel(pr_ref, gt_ref, out_ref, tp_acc, gt_acc, *,
                   eps, threshold, valid_rows, block_rows):
    i = pl.program_id(0)

    @pl.when(i == 0)
    def _():
        tp_acc[...] = jnp.zeros_like(tp_acc)
        gt_acc[...] = jnp.zeros_like(gt_acc)

    # Row-validity mask: only the last grid step may hang off the array edge,
    # and the out-of-bounds rows of the VMEM buffer hold unspecified data.
    row_ids = i * block_rows + jax.lax.broadcasted_iota(
        jnp.int32, (block_rows, LANES), 0)
    valid = row_ids < valid_rows

    # Threshold in the input dtype; jnp.where (not multiply-by-mask) so any
    # garbage (possibly NaN) in masked-off rows cannot leak into the sums.
    pr = jnp.where(valid & (pr_ref[...] > threshold), 1.0, 0.0)
    gt = jnp.where(valid, gt_ref[...].astype(jnp.float32), 0.0)

    # Pure element-wise (VPU) accumulation per step; cheap filler under DMA.
    tp_acc[...] += gt * pr
    gt_acc[...] += gt

    @pl.when(i == pl.num_programs(0) - 1)
    def _():
        tp = jnp.sum(tp_acc[...])
        gt_sum = jnp.sum(gt_acc[...])
        # recall = (tp + eps) / (tp + fn + eps), with tp + fn == sum(gt)
        out_ref[0, 0] = (tp + eps) / (gt_sum + eps)


def recall_pallas(y_pr, y_gt, eps=1e-07, threshold=0.5, max_block_rows=None):
    """Recall score over all elements of y_pr / y_gt.

    Matches Recall() defaults: activation identity, threshold=0.5,
    ignore_channels=None.
    """
    assert y_pr.shape == y_gt.shape

    # Keep the original dtype (no wrapper upcast): halves HBM traffic for
    # bf16/fp16 inputs; the kernel casts per-tile.
    pr_flat = jnp.ravel(y_pr)
    gt_flat = jnp.ravel(y_gt)

    n = pr_flat.shape[0]
    rem = n % LANES
    if rem:
        # TODO(synk): rare ragged-tail path (numel % 128 != 0) still pays a
        # padded copy; zero padding is neutral for recall.
        pad = LANES - rem
        pr_flat = jnp.pad(pr_flat, (0, pad))
        gt_flat = jnp.pad(gt_flat, (0, pad))

    rows = pr_flat.shape[0] // LANES
    pr2d = pr_flat.reshape(rows, LANES)
    gt2d = gt_flat.reshape(rows, LANES)

    if max_block_rows is None:
        itemsize = jnp.dtype(pr2d.dtype).itemsize
        max_block_rows = TARGET_TILE_BYTES // (LANES * itemsize)
    # Block second-to-last dim must be a multiple of 8 (or the full extent).
    max_block_rows = max(8, (int(max_block_rows) // 8) * 8)

    if rows <= max_block_rows:
        block_rows = rows          # single tile: full extent is always legal
    else:
        block_rows = max_block_rows
    num_tiles = pl.cdiv(rows, block_rows)

    kernel = functools.partial(
        _recall_kernel,
        eps=float(eps),            # plain Python floats -> no captured consts
        threshold=float(threshold),
        valid_rows=int(rows),
        block_rows=int(block_rows),
    )

    out = pl.pallas_call(
        kernel,
        out_shape=jax.ShapeDtypeStruct((1, 1), jnp.float32),
        grid_spec=pltpu.PrefetchScalarGridSpec(
            num_scalar_prefetch=0,
            grid=(num_tiles,),
            in_specs=[
                pl.BlockSpec((block_rows, LANES), lambda i: (i, 0)),
                pl.BlockSpec((block_rows, LANES), lambda i: (i, 0)),
            ],
            out_specs=pl.BlockSpec(memory_space=pltpu.MemorySpace.SMEM),
            scratch_shapes=[
                pltpu.VMEM((block_rows, LANES), jnp.float32),  # tp partials
                pltpu.VMEM((block_rows, LANES), jnp.float32),  # sum(gt) partials
            ],
        ),
        compiler_params=pltpu.CompilerParams(
            dimension_semantics=("arbitrary",),
        ),
    )(pr2d, gt2d)

    return out[0, 0]


def recall_reference(y_pr, y_gt, eps=1e-07, threshold=0.5):
    y_pr = y_pr.astype(jnp.float32)
    y_gt = y_gt.astype(jnp.float32)
    pr = (y_pr > threshold).astype(jnp.float32)
    tp = jnp.sum(y_gt * pr)
    fn = jnp.sum(y_gt) - tp
    return (tp + eps) / (tp + fn + eps)


if __name__ == "__main__":
    key = jax.random.PRNGKey(0)
    k1, k2, k3, k4 = jax.random.split(key, 4)

    # NCHW inputs, matching the PyTorch module's expected layout.
    B, C, H, W = 2, 4, 16, 16
    y_pr = jax.random.uniform(k1, (B, C, H, W), dtype=jnp.float32)
    y_gt = (jax.random.uniform(k2, (B, C, H, W)) > 0.5).astype(jnp.float32)

    score = jax.block_until_ready(recall_pallas(y_pr, y_gt))
    ref = recall_reference(y_pr, y_gt)
    assert jnp.allclose(score, ref, rtol=1e-5, atol=1e-6), (score, ref)

    # Multi-tile path with a ragged (masked) last tile: 2*5*16*16 = 2560 elems
    # -> 20 rows of 128, forced block of 8 rows -> 3 tiles, last has 4 valid.
    y_pr2 = jax.random.uniform(k3, (2, 5, 16, 16), dtype=jnp.float32)
    y_gt2 = (jax.random.uniform(k4, (2, 5, 16, 16)) > 0.5).astype(jnp.float32)
    score2 = jax.block_until_ready(recall_pallas(y_pr2, y_gt2, max_block_rows=8))
    ref2 = recall_reference(y_pr2, y_gt2)
    assert jnp.allclose(score2, ref2, rtol=1e-5, atol=1e-6), (score2, ref2)

    # bf16 inputs stream without any wrapper upcast.
    score3 = jax.block_until_ready(
        recall_pallas(y_pr.astype(jnp.bfloat16), y_gt.astype(jnp.bfloat16)))
    ref3 = recall_reference(y_pr.astype(jnp.bfloat16), y_gt.astype(jnp.bfloat16))
    assert jnp.allclose(score3, ref3, rtol=1e-3, atol=1e-4), (score3, ref3)

    print("KERNEL_OK")
</pallas_src>

<mosaic_0001>
module attributes {stable_mosaic.version = 11 : i64} {
  func.func @_recall_kernel(%arg0: i32, %arg1: memref<16x128xf32, #tpu.memory_space<vmem>>, %arg2: memref<16x128xf32, #tpu.memory_space<vmem>>, %arg3: memref<1x1xf32, #tpu.memory_space<smem>>, %arg4: memref<16x128xf32, #tpu.memory_space<vmem>>, %arg5: memref<16x128xf32, #tpu.memory_space<vmem>>) attributes {dimension_semantics = [#tpu.dimension_semantics<arbitrary>], iteration_bounds = array<i64: 1>, scalar_prefetch = 0 : i64, scratch_operands = 2 : i64, tpu.core_type = #tpu.core_type<tc>, window_params = [{transform_indices = @transform_0, window_bounds = array<i64: 16, 128>}, {transform_indices = @transform_1, window_bounds = array<i64: 16, 128>}, {transform_indices = @transform_2, window_bounds = array<i64: 1, 1>}]} {
    %c0_i32 = arith.constant 0 : i32
    %0 = arith.cmpi eq, %arg0, %c0_i32 : i32
    %1 = arith.extui %0 : i1 to i32
    %c0_i32_0 = arith.constant 0 : i32
    %2 = arith.cmpi ne, %1, %c0_i32_0 : i32
    scf.if %2 {
      %cst_18 = arith.constant 0.000000e+00 : f32
      %29 = vector.broadcast %cst_18 : f32 to vector<16x128xf32>
      %c0_19 = arith.constant 0 : index
      %c0_20 = arith.constant 0 : index
      %30 = vector.load %arg4[%c0_19, %c0_20] : memref<16x128xf32, #tpu.memory_space<vmem>>, vector<16x128xf32>
      tpu.vector_store %arg4[%c0_19, %c0_20], %29 {strides = array<i32>} : memref<16x128xf32, #tpu.memory_space<vmem>>, vector<16x128xf32>,
      %cst_21 = arith.constant 0.000000e+00 : f32
      %31 = vector.broadcast %cst_21 : f32 to vector<16x128xf32>
      %c0_22 = arith.constant 0 : index
      %c0_23 = arith.constant 0 : index
      %32 = vector.load %arg5[%c0_22, %c0_23] : memref<16x128xf32, #tpu.memory_space<vmem>>, vector<16x128xf32>
      tpu.vector_store %arg5[%c0_22, %c0_23], %31 {strides = array<i32>} : memref<16x128xf32, #tpu.memory_space<vmem>>, vector<16x128xf32>,
    } else {
    }
    %c16_i32 = arith.constant 16 : i32
    %3 = arith.muli %arg0, %c16_i32 : i32
    %4 = tpu.iota {dimensions = array<i32: 0>} : vector<16x128xi32>
    %5 = vector.broadcast %3 : i32 to vector<16x128xi32>
    %6 = arith.addi %5, %4 : vector<16x128xi32>
    %c16_i32_1 = arith.constant 16 : i32
    %7 = vector.broadcast %c16_i32_1 : i32 to vector<16x128xi32>
    %8 = arith.cmpi slt, %6, %7 : vector<16x128xi32>
    %c0 = arith.constant 0 : index
    %c0_2 = arith.constant 0 : index
    %9 = vector.load %arg1[%c0, %c0_2] : memref<16x128xf32, #tpu.memory_space<vmem>>, vector<16x128xf32>
    %cst = arith.constant 5.000000e-01 : f32
    %10 = vector.broadcast %cst : f32 to vector<16x128xf32>
    %11 = arith.cmpf ogt, %9, %10 : vector<16x128xf32>
    %12 = arith.andi %8, %11 : vector<16x128xi1>
    %cst_3 = arith.constant 1.000000e+00 : f32
    %cst_4 = arith.constant 0.000000e+00 : f32
    %13 = vector.broadcast %cst_3 : f32 to vector<16x128xf32>
    %14 = vector.broadcast %cst_4 : f32 to vector<16x128xf32>
    %15 = arith.select %12, %13, %14 : vector<16x128xi1>, vector<16x128xf32>
    %c0_5 = arith.constant 0 : index
    %c0_6 = arith.constant 0 : index
    %16 = vector.load %arg2[%c0_5, %c0_6] : memref<16x128xf32, #tpu.memory_space<vmem>>, vector<16x128xf32>
    %cst_7 = arith.constant 0.000000e+00 : f32
    %17 = vector.broadcast %cst_7 : f32 to vector<16x128xf32>
    %18 = arith.select %8, %16, %17 : vector<16x128xi1>, vector<16x128xf32>
    %c0_8 = arith.constant 0 : index
    %c0_9 = arith.constant 0 : index
    %19 = vector.load %arg4[%c0_8, %c0_9] : memref<16x128xf32, #tpu.memory_space<vmem>>, vector<16x128xf32>
    %20 = arith.mulf %18, %15 : vector<16x128xf32>
    %21 = arith.addf %19, %20 : vector<16x128xf32>
    %c0_10 = arith.constant 0 : index
    %c0_11 = arith.constant 0 : index
    %22 = vector.load %arg4[%c0_10, %c0_11] : memref<16x128xf32, #tpu.memory_space<vmem>>, vector<16x128xf32>
    tpu.vector_store %arg4[%c0_10, %c0_11], %21 {strides = array<i32>} : memref<16x128xf32, #tpu.memory_space<vmem>>, vector<16x128xf32>,
    %c0_12 = arith.constant 0 : index
    %c0_13 = arith.constant 0 : index
    %23 = vector.load %arg5[%c0_12, %c0_13] : memref<16x128xf32, #tpu.memory_space<vmem>>, vector<16x128xf32>
    %24 = arith.addf %23, %18 : vector<16x128xf32>
    %c0_14 = arith.constant 0 : index
    %c0_15 = arith.constant 0 : index
    %25 = vector.load %arg5[%c0_14, %c0_15] : memref<16x128xf32, #tpu.memory_space<vmem>>, vector<16x128xf32>
    tpu.vector_store %arg5[%c0_14, %c0_15], %24 {strides = array<i32>} : memref<16x128xf32, #tpu.memory_space<vmem>>, vector<16x128xf32>,
    %c0_i32_16 = arith.constant 0 : i32
    %26 = arith.cmpi eq, %arg0, %c0_i32_16 : i32
    %27 = arith.extui %26 : i1 to i32
    %c0_i32_17 = arith.constant 0 : i32
    %28 = arith.cmpi ne, %27, %c0_i32_17 : i32
    scf.if %28 {
      %c0_18 = arith.constant 0 : index
      %c0_19 = arith.constant 0 : index
      %29 = vector.load %arg4[%c0_18, %c0_19] : memref<16x128xf32, #tpu.memory_space<vmem>>, vector<16x128xf32>
      %30 = vector.shape_cast %29 : vector<16x128xf32> to vector<1x16x128xf32>
      %cst_20 = arith.constant dense<0.000000e+00> : vector<1xf32>
      %31 = vector.multi_reduction <add>, %30, %cst_20 [1, 2] : vector<1x16x128xf32> to vector<1xf32>
      %32 = vector.shape_cast %31 : vector<1xf32> to vector<1x1x1xf32>
      %33 = vector.extract %32[0, 0, 0] : f32 from vector<1x1x1xf32>
      %c0_21 = arith.constant 0 : index
      %c0_22 = arith.constant 0 : index
      %34 = vector.load %arg5[%c0_21, %c0_22] : memref<16x128xf32, #tpu.memory_space<vmem>>, vector<16x128xf32>
      %35 = vector.shape_cast %34 : vector<16x128xf32> to vector<1x16x128xf32>
      %cst_23 = arith.constant dense<0.000000e+00> : vector<1xf32>
      %36 = vector.multi_reduction <add>, %35, %cst_23 [1, 2] : vector<1x16x128xf32> to vector<1xf32>
      %37 = vector.shape_cast %36 : vector<1xf32> to vector<1x1x1xf32>
      %38 = vector.extract %37[0, 0, 0] : f32 from vector<1x1x1xf32>
      %cst_24 = arith.constant 1.000000e-07 : f32
      %39 = arith.addf %33, %cst_24 : f32
      %cst_25 = arith.constant 1.000000e-07 : f32
      %40 = arith.addf %38, %cst_25 : f32
      %41 = arith.divf %39, %40 : f32
      %c0_26 = arith.constant 0 : index
      %c0_27 = arith.constant 0 : index
      %42 = memref.load %arg3[%c0_26, %c0_27] : memref<1x1xf32, #tpu.memory_space<smem>>
      memref.store %41, %arg3[%c0_26, %c0_27] : memref<1x1xf32, #tpu.memory_space<smem>>
    } else {
    }
    return
  }
  func.func @transform_0(%arg0: i32) -> (i32, i32) {
    %c0_i32 = arith.constant 0 : i32
    %c0_i32_0 = arith.constant 0 : i32
    return %arg0, %c0_i32 : i32, i32
  }
  func.func @transform_1(%arg0: i32) -> (i32, i32) {
    %c0_i32 = arith.constant 0 : i32
    %c0_i32_0 = arith.constant 0 : i32
    return %arg0, %c0_i32 : i32, i32
  }
  func.func @transform_2(%arg0: i32) -> (i32, i32) {
    %c0_i32 = arith.constant 0 : i32
    %c0_i32_0 = arith.constant 0 : i32
    %c0_i32_1 = arith.constant 0 : i32
    return %c0_i32, %c0_i32_0 : i32, i32
  }
}

</mosaic_0001>

<bundles_post_ra>
// kernel: tpu_custom_call.1
= control target key start
LH: loop header
LB: loop body
LE: loop exit
PB: predicated region body
PF: predicated region fallthrough
CT: control target
= control target key end

     0   :  { %7 = vsyncpa [#allocation5], 0  ;;  %s264_s0 = inlined_call_operand.hbm [shape: f32[16,128], index: 0, kind: input, shape index: {}]   ;;  %s265_s1 = inlined_call_operand.hbm [shape: f32[16,128], index: 1, kind: input, shape index: {}]   ;;  %s266_s2 = inlined_call_operand.hbm [shape: f32[1,1], index: 2, kind: output, shape index: {}]  }
   0x1   :  { %8 = vsyncpa [#allocation8], 0 }
   0x2   :  { %9 = vsyncpa [#allocation6], 0  ;;  %s207_s9 = smov [#allocation4]   ;;  %s147_s13 = scalar_lea.hbm %s264_s0, 256 }
   0x3   :  { %s15_s10 = sshll.u32 %s207_s9, 4  ;;  %p148_p0 = scmp.ne.s32.totalorder %s264_s0, %s147_s13  ;;  %s16_s10 = int_to_ptr.vmem [resolvable:$true] %s15_s10 }
   0x4   :  { %p151_p1 = scmp.lt.u32.totalorder %s147_s13, %s264_s0 }
   0x6   :  { %p153_p2 = pnand %p151_p1, %p148_p0 }
   0x8   :  { %156 = shalt.err (!%p153_p2)
}
   0x9   :  { %s157_s18 = scalar_lea.vmem %s16_s10, 256  ;;  %p162_p4 = scmp.lt.s32.totalorder %s16_s10, %s16_s10 }
   0xa   :  { %p158_p3 = scmp.ne.s32.totalorder %s16_s10, %s157_s18  ;;  %p163_p5 = scmp.lt.s32.totalorder %s157_s18, %s157_s18 }
   0xc   :  { %p164_p6 = por %p163_p5, %p162_p4 }
   0xe   :  { %p165_p7 = pnand %p164_p6, %p158_p3 }
  0x10   :  { %168 = shalt.err (!%p165_p7)
}
  0x11   :  { %s208_s19 = smov 128   ;;  %s209_s20 = smov 8  }
  0x12   :  { %21 = dma.hbm_to_vmem [thread:$0]  %s264_s0, 256, %s16_s10, [#allocation5], %s208_s19, %s208_s19, %s209_s20  }
  0x13   :  { %s210_s23 = smov [#allocation7]   ;;  %s169_s27 = scalar_lea.hbm %s265_s1, 256 }
  0x14   :  { %s27_s24 = sshll.u32 %s210_s23, 4  ;;  %p170_p8 = scmp.ne.s32.totalorder %s265_s1, %s169_s27  ;;  %s28_s24 = int_to_ptr.vmem [resolvable:$true] %s27_s24 }
  0x15   :  { %p173_p9 = scmp.lt.u32.totalorder %s169_s27, %s265_s1 }
  0x17   :  { %p175_p10 = pnand %p173_p9, %p170_p8 }
  0x19   :  { %178 = shalt.err (!%p175_p10)
}
  0x1a   :  { %s179_s4 = scalar_lea.vmem %s28_s24, 256  ;;  %p184_p12 = scmp.lt.s32.totalorder %s28_s24, %s28_s24 }
  0x1b   :  { %p180_p11 = scmp.ne.s32.totalorder %s28_s24, %s179_s4  ;;  %p185_p13 = scmp.lt.s32.totalorder %s179_s4, %s179_s4 }
  0x1d   :  { %p186_p0 = por %p185_p13, %p184_p12 }
  0x1f   :  { %p187_p1 = pnand %p186_p0, %p180_p11 }
  0x21   :  { %190 = shalt.err (!%p187_p1)
}
  0x22   :  { %33 = dma.hbm_to_vmem [thread:$0]  %s265_s1, 256, %s28_s24, [#allocation8], %s208_s19, %s208_s19, %s209_s20  }
  0x23   :  { %201 = dma.done.wait [#allocation5], 256  }
  0x24   :  { %202 = vsyncadd [#allocation5], 4294967040 }
  0x25   :  { %203 = dma.done.wait [#allocation8], 256  }
  0x26   :  { %204 = vsyncadd [#allocation8], 4294967040  ;;  %v57_v0 = vld [vmem:[#allocation4] sm:$0xff]  ;;  %v58_v1 = vld [vmem:[#allocation4 + $0x8] sm:$0xff]  ;;  %v211_v4 = vmov 0.0   ;;  %s191_s13 = scalar_lea.hbm %s266_s2, 16 }
  0x27   :  { %v65_v2 = vld [vmem:[#allocation7] sm:$0xff]  ;;  %vm59_vm0 = vcmp.gt.f32.partialorder %v57_v0, 0.5  ;;  %vm60_vm1 = vcmp.gt.f32.partialorder %v58_v1, 0.5  ;;  %v66_v3 = vld [vmem:[#allocation7 + $0x8] sm:$0xff]  ;;  %p192_p2 = scmp.ne.s32.totalorder %s266_s2, %s191_s13  ;;  %p195_p3 = scmp.lt.u32.totalorder %s191_s13, %s266_s2 }
  0x28   :  { %v63_v5 = vsel %vm59_vm0, 1.0, %v211_v4  ;;  %v64_v6 = vsel %vm60_vm1, 1.0, %v211_v4  ;;  %v100_v10 = vadd.f32 %v66_v3, %v65_v2 }
  0x29   :  { %v71_v7 = vmul.f32 %v65_v2, %v63_v5  ;;  %v72_v8 = vmul.f32 %v66_v3, %v64_v6  ;;  %p197_p4 = pnand %p195_p3, %p192_p2 }
  0x2b   :  { %v88_v9 = vadd.f32 %v72_v8, %v71_v7 }
  0x2d   :  { %89 = vadd.xlane.f32.xlu0 %v88_v9 }
  0x31   :  { %101 = vadd.xlane.f32.xlu0 %v100_v10 }
  0xba   :  { %v90_v11 = vpop.xlane.xlu0 %89 }
  0xbb   :  { %v91_v12 = vrot.slane %v90_v11, 4 }
  0xbd   :  { %v92_v13 = vadd.f32 %v91_v12, %v90_v11 }
  0xbe   :  { %v102_v14 = vpop.xlane.xlu0 %101 }
  0xbf   :  { %v93_v15 = vrot.slane %v92_v13, 2  ;;  %v103_v16 = vrot.slane %v102_v14, 4 }
  0xc1   :  { %v104_v17 = vadd.f32 %v103_v16, %v102_v14  ;;  %v94_v18 = vadd.f32 %v93_v15, %v92_v13 }
  0xc3   :  { %v105_v19 = vrot.slane %v104_v17, 2  ;;  %v95_v20 = vrot.slane %v94_v18, 1 }
  0xc5   :  { %v106_v21 = vadd.f32 %v105_v19, %v104_v17  ;;  %v96_v22 = vadd.f32 %v95_v20, %v94_v18 }
  0xc7   :  { %133 = vpush %v96_v22  ;;  %v107_v23 = vrot.slane %v106_v21, 1 }
  0xc9   :  { %v108_v24 = vadd.f32 %v107_v23, %v106_v21 }
  0xcb   :  { %135 = vpush %v108_v24 }
  0xf8   :  { %s134_s1 = spop %133 }
  0xf9   :  { %s110_s8 = sadd.f32 1e-07, %s134_s1 }
  0xfc   :  { %s136_s6 = spop %135 }
  0xfd   :  { %s111_s7 = sadd.f32 1e-07, %s136_s6 }
  0xff   :  { %v112_v25 = vstv %s111_s7 }
 0x100   :  { %145 = vrcp.f32 %v112_v25 }
 0x10a   :  { %v146_v26 = vpop.eup %145 }
 0x10b   :  { %137 = vpush %v146_v26 }
 0x13c   :  { %s138_s9 = spop %137 }
 0x13d   :  { %s115_s10 = smul.f32 %s138_s9, %s110_s8 }
 0x13f   :  { %117 = sst [smem:[#allocation9]] %s115_s10 }
 0x140   :  { %200 = shalt.err (!%p197_p4)
}
 0x141   :  { %s212_s18 = smov [#allocation9]  }
 0x142   :  { %125 = dma.smem_to_hbm %s212_s18, 16, %s266_s2, [#allocation6]  }
 0x143   :  { %205 = dma.done.wait [#allocation6], 16  }
 0x144   :  { %206 = vsyncadd [#allocation6], 4294967280 }
 0x145   :  { %129 = sfence }
 0x146   :  { %130 = vsyncpa [#allocation5], 1 }
 0x147   :  { %131 = vsyncpa [#allocation8], 1 }
 0x148   :  { %132 = vsyncpa [#allocation6], 1 }

</bundles_post_ra>
